<compile_context>
chip_gen: v5e
topology: v5e:2x2
jax: 0.10.0
libtpu: 0.0.40
codegen_flags: <defaults>
</compile_context>

<pallas_src>
import jax
import jax.numpy as jnp
from jax.experimental import pallas as pl
from jax.experimental.pallas import tpu as pltpu


def dqn_kernel(x_ref, w1_ref, b1_ref, w2_ref, b2_ref, w3_ref, b3_ref, out_ref):
    # fc1 (bf16 MXU operands, f32 accumulate) + bias/ReLU in f32 on the VPU.
    h1 = jnp.dot(x_ref[...], w1_ref[...], preferred_element_type=jnp.float32)
    h1 = jnp.maximum(h1 + b1_ref[...], 0.0)
    # fc2
    h2 = jnp.dot(h1.astype(jnp.bfloat16), w2_ref[...],
                 preferred_element_type=jnp.float32)
    h2 = jnp.maximum(h2 + b2_ref[...], 0.0)
    # fc3 (no activation); output last dim == full array dim (action_size).
    y = jnp.dot(h2.astype(jnp.bfloat16), w3_ref[...],
                preferred_element_type=jnp.float32)
    out_ref[...] = y + b3_ref[...]


def prepare_params(params):
    """One-time param prep (hoisted out of the per-step forward):
    bf16 weights for the MXU, f32 row-vector biases for the VPU."""
    w1, b1, w2, b2, w3, b3 = params
    return (w1.astype(jnp.bfloat16), b1.astype(jnp.float32).reshape(1, -1),
            w2.astype(jnp.bfloat16), b2.astype(jnp.float32).reshape(1, -1),
            w3.astype(jnp.bfloat16), b3.astype(jnp.float32).reshape(1, -1))


def dqn_forward(x, prepared_params, tm=1024):
    """x: (B, state_size, k) or (B, state_size*k). Returns (B, action_size) f32.

    prepared_params: output of prepare_params() (bf16 weights, f32 biases).
    """
    w1, b1, w2, b2, w3, b3 = prepared_params
    B = x.shape[0]
    x2d = x.reshape(B, -1)                        # PyTorch x.view(B, -1)
    in1 = x2d.shape[1]                            # state_size * k (e.g. 32)
    h1_dim, h2_dim = w1.shape[1], w2.shape[1]     # 128, 256
    action_size = w3.shape[1]

    # Batch tile: multiple of 8 sublanes, default 1024 rows. When the batch is
    # big enough, cap TM so the grid has >=2 steps (v7x megacore split; no-op
    # on single-TC v5e/v6e).
    B8 = 8 * pl.cdiv(B, 8)
    TM = min(tm, B8)
    if B8 >= 16:
        TM = min(TM, 8 * pl.cdiv(pl.cdiv(B8, 2), 8))
    TM = max(TM, 8)
    B_PAD = TM * pl.cdiv(B, TM)

    # x preprocessing: just a bf16 cast plus (at most) a small batch-row pad.
    x_p = x2d.astype(jnp.bfloat16)
    if B_PAD != B:
        x_p = jnp.pad(x_p, ((0, B_PAD - B), (0, 0)))

    grid = (B_PAD // TM,)
    resident = lambda shape: pl.BlockSpec(shape, lambda i: (0, 0))

    flops = 2 * B_PAD * (in1 * h1_dim + h1_dim * h2_dim + h2_dim * action_size)
    bytes_accessed = (
        2 * (x_p.size + w1.size + w2.size + w3.size)          # bf16
        + 4 * (b1.size + b2.size + b3.size)                   # f32 biases
        + 4 * B_PAD * action_size)                            # f32 out
    cost = pl.CostEstimate(flops=flops, transcendentals=0,
                           bytes_accessed=bytes_accessed)

    out = pl.pallas_call(
        dqn_kernel,
        out_shape=jax.ShapeDtypeStruct((B_PAD, action_size), jnp.float32),
        grid=grid,
        in_specs=[
            pl.BlockSpec((TM, in1), lambda i: (i, 0)),        # x: batch-tiled
            resident((in1, h1_dim)), resident((1, h1_dim)),
            resident((h1_dim, h2_dim)), resident((1, h2_dim)),
            resident((h2_dim, action_size)), resident((1, action_size)),
        ],
        out_specs=pl.BlockSpec((TM, action_size), lambda i: (i, 0)),
        compiler_params=pltpu.CompilerParams(
            dimension_semantics=("parallel",)),               # v7x: 2 TCs
        cost_estimate=cost,
    )(x_p, w1, b1, w2, b2, w3, b3)

    # Strip batch padding (kernel never sees padded output columns anymore).
    return out[:B]


def init_params(key, state_size, action_size, k=4):
    """Deterministic init mirroring nn.Linear shapes (stored transposed)."""
    in1 = state_size * k
    dims = [(in1, 128), (128, 256), (256, action_size)]
    params = []
    for fin, fout in dims:
        kw, kb, key = jax.random.split(key, 3)
        bound = 1.0 / jnp.sqrt(fin)
        w = jax.random.uniform(kw, (fin, fout), jnp.float32, -bound, bound)
        b = jax.random.uniform(kb, (1, fout), jnp.float32, -bound, bound)
        params += [w, b]
    return tuple(params)


def reference_forward(x, params):
    w1, b1, w2, b2, w3, b3 = params
    x2d = x.reshape(x.shape[0], -1).astype(jnp.float32)
    h1 = jnp.maximum(x2d @ w1 + b1, 0.0)
    h2 = jnp.maximum(h1 @ w2 + b2, 0.0)
    return h2 @ w3 + b3


if __name__ == "__main__":
    key = jax.random.PRNGKey(0)
    state_size, k, action_size, batch = 8, 4, 4, 2

    kx, kp = jax.random.split(key)
    x = jax.random.normal(kx, (batch, state_size, k), jnp.float32)
    params = init_params(kp, state_size, action_size, k)
    prepared = prepare_params(params)        # one-time weight/bias prep

    q = dqn_forward(x, prepared)
    q = jax.block_until_ready(q)

    q_ref = reference_forward(x, params)
    assert q.shape == (batch, action_size)
    # bf16 MXU operands with f32 accumulation -> relaxed tolerance vs f32 ref.
    assert jnp.allclose(q, q_ref, atol=2e-2, rtol=2e-2), "mismatch vs reference"

    print("KERNEL_OK")
</pallas_src>

<mosaic_0001>
module attributes {stable_mosaic.version = 11 : i64} {
  func.func @dqn_kernel(%arg0: i32, %arg1: memref<8x32xbf16, #tpu.memory_space<vmem>>, %arg2: memref<32x128xbf16, #tpu.memory_space<vmem>>, %arg3: memref<1x128xf32, #tpu.memory_space<vmem>>, %arg4: memref<128x256xbf16, #tpu.memory_space<vmem>>, %arg5: memref<1x256xf32, #tpu.memory_space<vmem>>, %arg6: memref<256x4xbf16, #tpu.memory_space<vmem>>, %arg7: memref<1x4xf32, #tpu.memory_space<vmem>>, %arg8: memref<8x4xf32, #tpu.memory_space<vmem>>) attributes {dimension_semantics = [#tpu.dimension_semantics<parallel>], iteration_bounds = array<i64: 1>, scalar_prefetch = 0 : i64, scratch_operands = 0 : i64, tpu.core_type = #tpu.core_type<tc>, window_params = [{transform_indices = @transform_0, window_bounds = array<i64: 8, 32>}, {pipeline_mode = #tpu.pipeline_mode<synchronous>, transform_indices = @transform_1, window_bounds = array<i64: 32, 128>}, {pipeline_mode = #tpu.pipeline_mode<synchronous>, transform_indices = @transform_2, window_bounds = array<i64: 1, 128>}, {pipeline_mode = #tpu.pipeline_mode<synchronous>, transform_indices = @transform_3, window_bounds = array<i64: 128, 256>}, {pipeline_mode = #tpu.pipeline_mode<synchronous>, transform_indices = @transform_4, window_bounds = array<i64: 1, 256>}, {pipeline_mode = #tpu.pipeline_mode<synchronous>, transform_indices = @transform_5, window_bounds = array<i64: 256, 4>}, {pipeline_mode = #tpu.pipeline_mode<synchronous>, transform_indices = @transform_6, window_bounds = array<i64: 1, 4>}, {transform_indices = @transform_7, window_bounds = array<i64: 8, 4>}]} {
    %c0 = arith.constant 0 : index
    %c0_0 = arith.constant 0 : index
    %0 = vector.load %arg1[%c0, %c0_0] : memref<8x32xbf16, #tpu.memory_space<vmem>>, vector<8x32xbf16>
    %c0_1 = arith.constant 0 : index
    %c0_2 = arith.constant 0 : index
    %1 = vector.load %arg2[%c0_1, %c0_2] : memref<32x128xbf16, #tpu.memory_space<vmem>>, vector<32x128xbf16>
    %cst = arith.constant dense<0.000000e+00> : vector<8x128xf32>
    %2 = tpu.matmul %0, %1, %cst {dimension_numbers = #tpu.dot_dimension_numbers<[1], [0], [0], [1], [0, 0, 1, 1], [], []>} : vector<8x32xbf16>, vector<32x128xbf16>, vector<8x128xf32> -> vector<8x128xf32>
    %c0_3 = arith.constant 0 : index
    %c0_4 = arith.constant 0 : index
    %3 = vector.load %arg3[%c0_3, %c0_4] : memref<1x128xf32, #tpu.memory_space<vmem>>, vector<1x128xf32>
    %4 = vector.broadcast %3 : vector<1x128xf32> to vector<8x128xf32>
    %5 = arith.addf %2, %4 : vector<8x128xf32>
    %cst_5 = arith.constant 0.000000e+00 : f32
    %6 = vector.broadcast %cst_5 : f32 to vector<8x128xf32>
    %7 = arith.maximumf %5, %6 : vector<8x128xf32>
    %8 = arith.truncf %7 : vector<8x128xf32> to vector<8x128xbf16>
    %c0_6 = arith.constant 0 : index
    %c0_7 = arith.constant 0 : index
    %9 = vector.load %arg4[%c0_6, %c0_7] : memref<128x256xbf16, #tpu.memory_space<vmem>>, vector<128x256xbf16>
    %cst_8 = arith.constant dense<0.000000e+00> : vector<8x256xf32>
    %10 = tpu.matmul %8, %9, %cst_8 {dimension_numbers = #tpu.dot_dimension_numbers<[1], [0], [0], [1], [0, 0, 1, 1], [], []>} : vector<8x128xbf16>, vector<128x256xbf16>, vector<8x256xf32> -> vector<8x256xf32>
    %c0_9 = arith.constant 0 : index
    %c0_10 = arith.constant 0 : index
    %11 = vector.load %arg5[%c0_9, %c0_10] : memref<1x256xf32, #tpu.memory_space<vmem>>, vector<1x256xf32>
    %12 = vector.broadcast %11 : vector<1x256xf32> to vector<8x256xf32>
    %13 = arith.addf %10, %12 : vector<8x256xf32>
    %cst_11 = arith.constant 0.000000e+00 : f32
    %14 = vector.broadcast %cst_11 : f32 to vector<8x256xf32>
    %15 = arith.maximumf %13, %14 : vector<8x256xf32>
    %16 = arith.truncf %15 : vector<8x256xf32> to vector<8x256xbf16>
    %c0_12 = arith.constant 0 : index
    %c0_13 = arith.constant 0 : index
    %17 = vector.load %arg6[%c0_12, %c0_13] : memref<256x4xbf16, #tpu.memory_space<vmem>>, vector<256x4xbf16>
    %cst_14 = arith.constant dense<0.000000e+00> : vector<8x4xf32>
    %18 = tpu.matmul %16, %17, %cst_14 {dimension_numbers = #tpu.dot_dimension_numbers<[1], [0], [0], [1], [0, 0, 1, 1], [], []>} : vector<8x256xbf16>, vector<256x4xbf16>, vector<8x4xf32> -> vector<8x4xf32>
    %c0_15 = arith.constant 0 : index
    %c0_16 = arith.constant 0 : index
    %19 = vector.load %arg7[%c0_15, %c0_16] : memref<1x4xf32, #tpu.memory_space<vmem>>, vector<1x4xf32>
    %20 = vector.broadcast %19 : vector<1x4xf32> to vector<8x4xf32>
    %21 = arith.addf %18, %20 : vector<8x4xf32>
    %c0_17 = arith.constant 0 : index
    %c0_18 = arith.constant 0 : index
    %22 = vector.load %arg8[%c0_17, %c0_18] : memref<8x4xf32, #tpu.memory_space<vmem>>, vector<8x4xf32>
    tpu.vector_store %arg8[%c0_17, %c0_18], %21 {strides = array<i32>} : memref<8x4xf32, #tpu.memory_space<vmem>>, vector<8x4xf32>,
    return
  }
  func.func @transform_0(%arg0: i32) -> (i32, i32) {
    %c0_i32 = arith.constant 0 : i32
    %c0_i32_0 = arith.constant 0 : i32
    return %arg0, %c0_i32 : i32, i32
  }
  func.func @transform_1(%arg0: i32) -> (i32, i32) {
    %c0_i32 = arith.constant 0 : i32
    %c0_i32_0 = arith.constant 0 : i32
    %c0_i32_1 = arith.constant 0 : i32
    return %c0_i32, %c0_i32_0 : i32, i32
  }
  func.func @transform_2(%arg0: i32) -> (i32, i32) {
    %c0_i32 = arith.constant 0 : i32
    %c0_i32_0 = arith.constant 0 : i32
    %c0_i32_1 = arith.constant 0 : i32
    return %c0_i32, %c0_i32_0 : i32, i32
  }
  func.func @transform_3(%arg0: i32) -> (i32, i32) {
    %c0_i32 = arith.constant 0 : i32
    %c0_i32_0 = arith.constant 0 : i32
    %c0_i32_1 = arith.constant 0 : i32
    return %c0_i32, %c0_i32_0 : i32, i32
  }
  func.func @transform_4(%arg0: i32) -> (i32, i32) {
    %c0_i32 = arith.constant 0 : i32
    %c0_i32_0 = arith.constant 0 : i32
    %c0_i32_1 = arith.constant 0 : i32
    return %c0_i32, %c0_i32_0 : i32, i32
  }
  func.func @transform_5(%arg0: i32) -> (i32, i32) {
    %c0_i32 = arith.constant 0 : i32
    %c0_i32_0 = arith.constant 0 : i32
    %c0_i32_1 = arith.constant 0 : i32
    return %c0_i32, %c0_i32_0 : i32, i32
  }
  func.func @transform_6(%arg0: i32) -> (i32, i32) {
    %c0_i32 = arith.constant 0 : i32
    %c0_i32_0 = arith.constant 0 : i32
    %c0_i32_1 = arith.constant 0 : i32
    return %c0_i32, %c0_i32_0 : i32, i32
  }
  func.func @transform_7(%arg0: i32) -> (i32, i32) {
    %c0_i32 = arith.constant 0 : i32
    %c0_i32_0 = arith.constant 0 : i32
    return %arg0, %c0_i32 : i32, i32
  }
}

</mosaic_0001>

<bundles_post_ra>
// kernel: tpu_custom_call.1
= control target key start
LH: loop header
LB: loop body
LE: loop exit
PB: predicated region body
PF: predicated region fallthrough
CT: control target
= control target key end

     0   :  { %12 = vsyncpa [#allocation3], 0  ;;  %s869_s0 = inlined_call_operand.vmem [shape: bf16[8,32], index: 0, kind: input, shape index: {}]   ;;  %s870_s1 = inlined_call_operand.hbm [shape: bf16[32,128], index: 1, kind: input, shape index: {}]   ;;  %s871_s2 = inlined_call_operand.hbm [shape: f32[1,128], index: 2, kind: input, shape index: {}]   ;;  %s872_s3 = inlined_call_operand.vmem [shape: bf16[128,256], index: 3, kind: input, shape index: {}]   ;;  %s873_s4 = inlined_call_operand.hbm [shape: f32[1,256], index: 4, kind: input, shape index: {}]   ;;  %s874_s5 = inlined_call_operand.vmem [shape: bf16[256,4], index: 5, kind: input, shape index: {}]   ;;  %s875_s6 = inlined_call_operand.vmem [shape: f32[1,4], index: 6, kind: input, shape index: {}]   ;;  %s876_s7 = inlined_call_operand.vmem [shape: f32[8,4], index: 7, kind: output, shape index: {}]  }
   0x1   :  { %13 = vsyncpa [#allocation5], 0  ;;  %s34_s26 = sshll.u32 %s871_s2, 4  ;;  %s662_s27 = smov [#allocation4]   ;;  %s35_s26 = int_to_ptr.hbm [resolvable:$true] %s34_s26 }
   0x2   :  { %s36_s28 = sshll.u32 %s662_s27, 4  ;;  %s20_s8 = sshll.u32 %s870_s1, 4  ;;  %s37_s28 = int_to_ptr.vmem [resolvable:$true] %s36_s28  ;;  %s21_s8 = int_to_ptr.hbm [resolvable:$true] %s20_s8 }
   0x3   :  { %39 = dma.hbm_to_vmem [thread:$0]  %s35_s26, 16, %s37_s28, [#allocation5]  }
   0x4   :  { %s663_s9 = smov [#allocation2]   ;;  %s664_s11 = smov 64  }
   0x5   :  { %s22_s10 = sshll.u32 %s663_s9, 4  ;;  %s665_s12 = smov 4   ;;  %s23_s10 = int_to_ptr.vmem [resolvable:$true] %s22_s10 }
   0x6   :  { %28 = dma.hbm_to_vmem [thread:$0]  %s21_s8, 256, %s23_s10, [#allocation3], %s664_s11, %s664_s11, %s665_s12  }
   0x7   :  { %s47_s2 = sshll.u32 %s873_s4, 4  ;;  %s666_s15 = smov [#allocation6]   ;;  %s48_s2 = int_to_ptr.hbm [resolvable:$true] %s47_s2 }
   0x8   :  { %s49_s16 = sshll.u32 %s666_s15, 4  ;;  %s50_s16 = int_to_ptr.vmem [resolvable:$true] %s49_s16 }
   0x9   :  { %52 = dma.hbm_to_vmem [thread:$0]  %s48_s2, 32, %s50_s16, [#allocation5]  }
   0xa   :  { %658 = dma.done.wait [#allocation3], 256  }
   0xb   :  { %659 = vsyncadd [#allocation3], 4294967040 }
   0xc   :  { %660 = dma.done.wait [#allocation5], 48  }
   0xd   :  { %661 = vsyncadd [#allocation5], 4294967248  ;;  %v546_v0 = vld [vmem:[#allocation2 + $0x8] sm:$0xff]  ;;  %v545_v1 = vld [vmem:[#allocation2] sm:$0xff]  ;;  %vm91_vm0 = vcmask 261120   ;;  %vm400_vm1 = vcmask 31744  }
   0xe   :  { %v475_v2 = vld [vmem:[%s872_s3 + $0x70] sm:$0xf]  ;;  %v562_v3 = vld [vmem:[%s872_s3 + $0x74] sm:$0xf0]  ;;  %v561_v4 = vld [vmem:[%s872_s3 + $0x74] sm:$0xf]  ;;  %101 = vmatpush.bf16.msra.mxu0 %v546_v0 }
   0xf   :  { %v476_v5 = vor.u32 %v562_v3, %v475_v2  ;;  %v477_v6 = vld [vmem:[%s872_s3 + $0x78] sm:$0xf0]  ;;  %v467_v7 = vld [vmem:[%s872_s3 + $0x60] sm:$0xf]  ;;  %v560_v8 = vld [vmem:[%s872_s3 + $0x64] sm:$0xf0] }
  0x10   :  { %v480_v9 = vor.u32 %v561_v4, %v477_v6  ;;  %v559_v10 = vld [vmem:[%s872_s3 + $0x64] sm:$0xf]  ;;  %v469_v11 = vld [vmem:[%s872_s3 + $0x68] sm:$0xf0]  ;;  %v468_v12 = vor.u32 %v560_v8, %v467_v7  ;;  %v459_v14 = vld [vmem:[%s872_s3 + $0x50] sm:$0xf] }
  0x11   :  { %212 = vmatpush.bf16.msra.mxu1 %v476_v5  ;;  %v472_v13 = vor.u32 %v559_v10, %v469_v11  ;;  %v558_v15 = vld [vmem:[%s872_s3 + $0x54] sm:$0xf0]  ;;  %v70_v16 = vld [vmem:[%s869_s0] sm:$0xf]  ;;  %v557_v17 = vld [vmem:[%s872_s3 + $0x54] sm:$0xf] }
  0x12   :  { %225 = vmatpush.bf16.msra.mxu2 %v480_v9  ;;  %102 = vmatpush.bf16.msra.mxu0 %v545_v1  ;;  %v461_v18 = vld [vmem:[%s872_s3 + $0x58] sm:$0xf0]  ;;  %v460_v19 = vor.u32 %v558_v15, %v459_v14  ;;  %v451_v20 = vld [vmem:[%s872_s3 + $0x40] sm:$0xf]  ;;  %v556_v22 = vld [vmem:[%s872_s3 + $0x44] sm:$0xf0] }
  0x13   :  { %v464_v21 = vor.u32 %v557_v17, %v461_v18  ;;  %v555_v23 = vld [vmem:[%s872_s3 + $0x44] sm:$0xf]  ;;  %v453_v24 = vld [vmem:[%s872_s3 + $0x48] sm:$0xf0]  ;;  %v452_v25 = vor.u32 %v556_v22, %v451_v20  ;;  %v443_v27 = vld [vmem:[%s872_s3 + $0x30] sm:$0xf] }
  0x14   :  { %v456_v26 = vor.u32 %v555_v23, %v453_v24  ;;  %v554_v28 = vld [vmem:[%s872_s3 + $0x34] sm:$0xf0]  ;;  %v553_v29 = vld [vmem:[%s872_s3 + $0x34] sm:$0xf]  ;;  %v445_v30 = vld [vmem:[%s872_s3 + $0x38] sm:$0xf0] }
  0x15   :  { %213 = vmatpush.bf16.msra.mxu1 %v468_v12  ;;  %416 = vmatmul.msk.bf16.vlgmr.msra.gmra.mxu0 %vm91_vm0, %v70_v16  ;;  %v444_v31 = vor.u32 %v554_v28, %v443_v27  ;;  %v448_v32 = vor.u32 %v553_v29, %v445_v30  ;;  %v435_v33 = vld [vmem:[%s872_s3 + $0x20] sm:$0xf]  ;;  %v552_v34 = vld [vmem:[%s872_s3 + $0x24] sm:$0xf0]  ;;  %v551_v35 = vld [vmem:[%s872_s3 + $0x24] sm:$0xf] }
  0x16   :  { %226 = vmatpush.bf16.msra.mxu2 %v472_v13  ;;  %v437_v36 = vld [vmem:[%s872_s3 + $0x28] sm:$0xf0]  ;;  %v436_v37 = vor.u32 %v552_v34, %v435_v33  ;;  %v427_v39 = vld [vmem:[%s872_s3 + $0x10] sm:$0xf]  ;;  %v550_v40 = vld [vmem:[%s872_s3 + $0x14] sm:$0xf0] }
  0x17   :  { %v440_v38 = vor.u32 %v551_v35, %v437_v36  ;;  %v549_v41 = vld [vmem:[%s872_s3 + $0x14] sm:$0xf]  ;;  %v428_v42 = vor.u32 %v550_v40, %v427_v39  ;;  %v429_v43 = vld [vmem:[%s872_s3 + $0x18] sm:$0xf0]  ;;  %v419_v45 = vld [vmem:[%s872_s3] sm:$0xf] }
  0x18   :  { %v432_v44 = vor.u32 %v549_v41, %v429_v43  ;;  %v548_v46 = vld [vmem:[%s872_s3 + $0x4] sm:$0xf0]  ;;  %v547_v47 = vld [vmem:[%s872_s3 + $0x4] sm:$0xf]  ;;  %v421_v49 = vld [vmem:[%s872_s3 + $0x8] sm:$0xf0] }
  0x19   :  { %214 = vmatpush.bf16.msra.mxu1 %v460_v19  ;;  %v420_v48 = vor.u32 %v548_v46, %v419_v45  ;;  %v424_v50 = vor.u32 %v547_v47, %v421_v49  ;;  %v570_v51 = vld [vmem:[%s874_s5 + $0x38] sm:$0xff]  ;;  %v569_v53 = vld [vmem:[%s874_s5 + $0x30] sm:$0xff]  ;;  %v568_v55 = vld [vmem:[%s874_s5 + $0x28] sm:$0xff] }
  0x1a   :  { %227 = vmatpush.bf16.msra.mxu2 %v464_v21  ;;  %v578_v52 = vld [vmem:[%s874_s5 + $0x78] sm:$0xff]  ;;  %374 = vmatpush.bf16.msra.mxu3 %v570_v51  ;;  %v577_v54 = vld [vmem:[%s874_s5 + $0x70] sm:$0xff]  ;;  %v576_v56 = vld [vmem:[%s874_s5 + $0x68] sm:$0xff] }
  0x1b   :  { %387 = vmatpush.bf16.msrb.mxu0 %v578_v52  ;;  %v567_v57 = vld [vmem:[%s874_s5 + $0x20] sm:$0xff]  ;;  %v566_v59 = vld [vmem:[%s874_s5 + $0x18] sm:$0xff]  ;;  %v565_v61 = vld [vmem:[%s874_s5 + $0x10] sm:$0xff] }
  0x1c   :  { %v575_v58 = vld [vmem:[%s874_s5 + $0x60] sm:$0xff]  ;;  %v574_v60 = vld [vmem:[%s874_s5 + $0x58] sm:$0xff]  ;;  %v584_v62 = vld [vmem:[#allocation4] ss:$0 sm:$0xff] }
  0x1d   :  { %215 = vmatpush.bf16.msra.mxu1 %v452_v25  ;;  %v564_v4 = vld [vmem:[%s874_s5 + $0x8] sm:$0xff]  ;;  %v573_v5 = vld [vmem:[%s874_s5 + $0x50] sm:$0xff]  ;;  %v563_v6 = vld [vmem:[%s874_s5] sm:$0xff] }
  0x1e   :  { %228 = vmatpush.bf16.msra.mxu2 %v456_v26  ;;  %375 = vmatpush.bf16.msra.mxu3 %v569_v53  ;;  %v572_v7 = vld [vmem:[%s874_s5 + $0x48] sm:$0xff]  ;;  %v571_v8 = vld [vmem:[%s874_s5 + $0x40] sm:$0xff]  ;;  %v126_v9 = vld [vmem:[#allocation6] sm:$0x3] }
  0x1f   :  { %388 = vmatpush.bf16.msrb.mxu0 %v577_v54  ;;  %v128_v10 = vperm.slane %v126_v9, 0  ;;  %v129_v14 = vperm.slane %v126_v9, 1  ;;  %v585_v22 = vld [vmem:[%s875_s6] ss:$0 sm:$0xff] }
  0x21   :  { %216 = vmatpush.bf16.msra.mxu1 %v444_v31 }
  0x22   :  { %229 = vmatpush.bf16.msra.mxu2 %v448_v32  ;;  %376 = vmatpush.bf16.msra.mxu3 %v568_v55 }
  0x23   :  { %389 = vmatpush.bf16.msrb.mxu0 %v576_v56 }
  0x25   :  { %217 = vmatpush.bf16.msra.mxu1 %v436_v37 }
  0x26   :  { %230 = vmatpush.bf16.msra.mxu2 %v440_v38  ;;  %377 = vmatpush.bf16.msra.mxu3 %v567_v57 }
  0x27   :  { %390 = vmatpush.bf16.msrb.mxu0 %v575_v58 }
  0x29   :  { %218 = vmatpush.bf16.msra.mxu1 %v428_v42 }
  0x2a   :  { %231 = vmatpush.bf16.msra.mxu2 %v432_v44  ;;  %378 = vmatpush.bf16.msra.mxu3 %v566_v59 }
  0x2b   :  { %391 = vmatpush.bf16.msrb.mxu0 %v574_v60 }
  0x2d   :  { %219 = vmatpush.bf16.msra.mxu1 %v420_v48 }
  0x2e   :  { %232 = vmatpush.bf16.msra.mxu2 %v424_v50  ;;  %379 = vmatpush.bf16.msra.mxu3 %v565_v61 }
  0x2f   :  { %392 = vmatpush.bf16.msrb.mxu0 %v573_v5 }
  0x32   :  { %380 = vmatpush.bf16.msra.mxu3 %v564_v4 }
  0x33   :  { %393 = vmatpush.bf16.msrb.mxu0 %v572_v7 }
  0x36   :  { %381 = vmatpush.bf16.msra.mxu3 %v563_v6 }
  0x37   :  { %394 = vmatpush.bf16.msrb.mxu0 %v571_v8 }
  0x92   :  { %v104_v63 = vpop.f32.mrf.mxu0 }
  0x93   :  { %v105_v0 = vadd.f32 %v584_v62, %v104_v63 }
  0x95   :  { %v108_v1 = vmax.f32 %v105_v0, 0.0 }
  0x97   :  { %v109_v2 = vpack.c.bf16 %v108_v1, %v108_v1 }
  0x99   :  { %220 = vmatmul.bf16.vlgmr.msra.gmra.mxu1 %v109_v2  ;;  %233 = vmatmul.bf16.vlgmr.msra.gmra.mxu2 %v109_v2 }
  0x9a   :  { %v106_v3 = vpop.f32.mrf.mxu0 }
 0x116   :  { %v221_v11 = vpop.f32.mrf.mxu1 }
 0x117   :  { %v222_v12 = vadd.f32 %v221_v11, %v128_v10 }
 0x119   :  { %v238_v13 = vmax.f32 %v222_v12, 0.0 }
 0x11b   :  { %v240_v15 = vpack.c.bf16 %v238_v13, %v238_v13 }
 0x11c   :  { %v234_v16 = vpop.f32.mrf.mxu2 }
 0x11d   :  { %v235_v17 = vadd.f32 %v234_v16, %v129_v14  ;;  %382 = vmatmul.bf16.vlgmr.msra.gmra.mxu3 %v240_v15 }
 0x11e   :  { %v223_v18 = vpop.f32.mrf.mxu1 }
 0x11f   :  { %v239_v19 = vmax.f32 %v235_v17, 0.0 }
 0x121   :  { %v241_v20 = vpack.c.bf16 %v239_v19, %v239_v19 }
 0x123   :  { %395 = vmatmul.bf16.vlgmr.msrb.gmra.mxu0 %v241_v20 }
 0x124   :  { %v236_v21 = vpop.f32.mrf.mxu2 }
 0x1a0   :  { %v383_v23 = vpop.f32.mrf.mxu3  ;;  %v396_v24 = vpop.f32.mrf.mxu0 }
 0x1a1   :  { %v384_v25 = vadd.f32 %v585_v22, %v383_v23 }
 0x1a3   :  { %v397_v26 = vadd.f32 %v396_v24, %v384_v25 }
 0x1a5   :  { %401 = vst.msk [vmem:[%s876_s7] sm:$0xff] %vm400_vm1, %v397_v26 }
 0x1a8   :  { %v385_v27 = vpop.f32.mrf.mxu3  ;;  %v398_v28 = vpop.f32.mrf.mxu0 }
 0x1a9   :  { %406 = vsyncpa [#allocation3], 1 }
 0x1aa   :  { %407 = vsyncpa [#allocation5], 1 }

</bundles_post_ra>
